<compile_context>
chip_gen: v7x
topology: tpu7x:2x2x1
jax: 0.10.0
libtpu: 0.0.40
codegen_flags: <defaults>
</compile_context>

<pallas_src>
import jax
import jax.numpy as jnp
from jax import lax
from jax.experimental import pallas as pl
from jax.experimental.pallas import tpu as pltpu

BN_EPS = 1e-5


def _vmem_limit_bytes():
    """Generation-aware VMEM limit: 3/4 of physical VMEM, capped at 112 MiB."""
    try:
        phys = pltpu.get_tpu_info().vmem_capacity_bytes
    except Exception:
        phys = 64 << 20          # conservative fallback (v7x physical VMEM)
    return int(min(phys * 3 // 4, 112 << 20))


def _pick_tb(B, C, N, block_budget_bytes):
    """Batches per grid step: largest divisor of B under the VMEM block budget."""
    bytes_per_batch = 4 * (C * N * 4)      # x block + out block, double-buffered
    cap = max(1, block_budget_bytes // max(bytes_per_batch, 1))
    if C > 16:
        cap = min(cap, 16)                 # bound the unrolled per-batch MXU loop
    if B >= 2:
        cap = min(cap, B // 2)             # keep >= 2 grid steps (v7x megacore)
    cap = max(cap, 1)
    tb = 1
    for d in range(1, min(B, cap) + 1):
        if B % d == 0:
            tb = d
    return tb


def _agg_conv(x, w3, cw, cb):
    """Graph aggregation (closed form) + 1x1 conv for a (TB, C, N) block.

    x:  (TB, C, N) features, w3: (TB, 1, N) attention logits,
    cw: (C, C) conv weight, cb: (C, 1) conv bias.  Returns z: (TB, C, N).
    """
    TB, C, N = x.shape

    # Attention + Laplacian normalization reduced to per-batch scalars.
    wa = jnp.maximum(jnp.tanh(w3), 0.0)               # relu(tanh(w)), (TB, 1, N)
    s = jnp.sum(wa * wa, axis=-1, keepdims=True)      # (TB, 1, 1)
    d2 = 1.0 / (jnp.float32(N) * s + 1.0)             # (TB, 1, 1) == 1 / D_out

    # y = L @ x^T with L = d2 * (s * ones + I):  one column sum + scaled add.
    colsum = jnp.sum(x, axis=-1, keepdims=True)       # (TB, C, 1)
    y = d2 * (s * colsum + x)                         # (TB, C, N)

    # 1x1 conv (C -> C), vectorised over the TB batches of the block.
    if C <= 16:
        # Tiny channel count: VPU broadcast FMAs (MXU would be <1% utilised).
        z = jnp.broadcast_to(cb[None, :, :], (TB, C, N))   # hoisted bias bcast
        for c in range(C):
            z = z + cw[:, c:c + 1][None, :, :] * y[:, c:c + 1, :]
    else:
        # Larger channel count: per-batch f32 GEMM on the MXU (f32 kept for
        # accuracy; the bf16 cast was flagged as a numerical risk in review).
        zs = [jnp.dot(cw, y[b], preferred_element_type=jnp.float32) + cb
              for b in range(TB)]
        z = jnp.stack(zs, axis=0)
    return z


def stats_kernel(x_ref, w_ref, cw_ref, cb_ref, stats_ref):
    """Pass 1: BN partial statistics only; the pre-BN activation never hits HBM.

    x_ref: (TB, C, N), w_ref: (TB, 1, N), cw_ref: (C, C), cb_ref: (C, 1)
    stats_ref: (1, 2, C)  -- row 0 = sum_z, row 1 = sum_z^2 over this block.
    """
    z = _agg_conv(x_ref[...], w_ref[...], cw_ref[...], cb_ref[...])  # (TB, C, N)
    zsum = jnp.sum(jnp.sum(z, axis=-1), axis=0, keepdims=True)       # (1, C)
    zsq = jnp.sum(jnp.sum(z * z, axis=-1), axis=0, keepdims=True)    # (1, C)
    stats_ref[0, 0:1, :] = zsum
    stats_ref[0, 1:2, :] = zsq


def apply_kernel(x_ref, w_ref, cw_ref, cb_ref, aff_ref, o_ref):
    """Pass 2: recompute aggregation + conv, apply folded BN affine + ReLU."""
    z = _agg_conv(x_ref[...], w_ref[...], cw_ref[...], cb_ref[...])  # (TB, C, N)
    scale = aff_ref[:, 0:1][None, :, :]     # (1, C, 1)
    shift = aff_ref[:, 1:2][None, :, :]     # (1, C, 1)
    o_ref[...] = jnp.maximum(z * scale + shift, 0.0)


def gan_block(x_nchw, w, conv_w, conv_b, gamma, beta):
    """x_nchw: (B, C, N, 1) float32, w: (B, N) float32 -> (B, C, N, 1)."""
    B, C, N, W1 = x_nchw.shape
    assert W1 == 1

    # Free reshapes only — no transposes; N stays on the 128-wide lane axis.
    xf = x_nchw.reshape(B, C, N).astype(jnp.float32)
    wf = w.reshape(B, 1, N).astype(jnp.float32)
    cw = conv_w.reshape(C, C).astype(jnp.float32)
    cb = conv_b.reshape(C, 1).astype(jnp.float32)

    vmem_limit = _vmem_limit_bytes()
    tb = _pick_tb(B, C, N, min(vmem_limit // 8, 6 << 20))
    nb = B // tb

    cparams = pltpu.CompilerParams(
        dimension_semantics=("parallel",),
        vmem_limit_bytes=vmem_limit,
    )

    x_spec = pl.BlockSpec((tb, C, N), lambda i: (i, 0, 0))
    w_spec = pl.BlockSpec((tb, 1, N), lambda i: (i, 0, 0))
    cw_spec = pl.BlockSpec((C, C), lambda i: (0, 0))
    cb_spec = pl.BlockSpec((C, 1), lambda i: (0, 0))

    # Pass 1: per-block BN statistics (sum / sum-of-squares), merged output.
    stats = pl.pallas_call(
        stats_kernel,
        out_shape=jax.ShapeDtypeStruct((nb, 2, C), jnp.float32),
        grid=(nb,),
        in_specs=[x_spec, w_spec, cw_spec, cb_spec],
        out_specs=pl.BlockSpec((1, 2, C), lambda i: (i, 0, 0)),
        compiler_params=cparams,
    )(xf, wf, cw, cb)

    # Tiny cross-block reduction: fold training-mode BN into a per-channel affine.
    count = jnp.float32(B * N)
    mean = jnp.sum(stats[:, 0, :], axis=0) / count               # (C,)
    ex2 = jnp.sum(stats[:, 1, :], axis=0) / count                # (C,)
    var = jnp.maximum(ex2 - mean * mean, 0.0)                    # clamp (review)
    scale = gamma.astype(jnp.float32) * lax.rsqrt(var + BN_EPS)
    shift = beta.astype(jnp.float32) - mean * scale
    affine = jnp.stack([scale, shift], axis=-1)                  # (C, 2)

    # Pass 2: recompute aggregation + conv, apply BN affine + ReLU, write out.
    out = pl.pallas_call(
        apply_kernel,
        out_shape=jax.ShapeDtypeStruct((B, C, N), jnp.float32),
        grid=(nb,),
        in_specs=[x_spec, w_spec, cw_spec, cb_spec,
                  pl.BlockSpec((C, 2), lambda i: (0, 0))],
        out_specs=pl.BlockSpec((tb, C, N), lambda i: (i, 0, 0)),
        compiler_params=cparams,
    )(xf, wf, cw, cb, affine)

    return out.reshape(B, C, N, 1)


def gan_block_reference(x_nchw, w, conv_w, conv_b, gamma, beta):
    """Pure-JAX reference mirroring the PyTorch forward (training-mode BN)."""
    B, C, N, _ = x_nchw.shape
    hp = lax.Precision.HIGHEST
    wa = jnp.maximum(jnp.tanh(w), 0.0)[..., None]                  # (B, N, 1)
    A = jnp.einsum('bni,bnj->bij', wa, wa, precision=hp)           # (B, 1, 1)
    A = A + jnp.eye(N)[None]                                       # (B, N, N)
    D_out = jnp.sum(A, axis=-1)
    D = jnp.sqrt(1.0 / D_out)
    Dm = jax.vmap(jnp.diag)(D)
    L = jnp.einsum('bij,bjk->bik',
                   jnp.einsum('bij,bjk->bik', Dm, A, precision=hp), Dm,
                   precision=hp)
    xt = jnp.transpose(x_nchw[..., 0], (0, 2, 1))                  # (B, N, C)
    y = jnp.einsum('bij,bjc->bic', L, xt, precision=hp)            # (B, N, C)
    y = jnp.transpose(y, (0, 2, 1))[..., None]                     # (B, C, N, 1)
    z = jnp.einsum('dc,bcnw->bdnw', conv_w, y, precision=hp) \
        + conv_b[None, :, None, None]
    mean = jnp.mean(z, axis=(0, 2, 3), keepdims=True)
    var = jnp.mean((z - mean) ** 2, axis=(0, 2, 3), keepdims=True)
    zn = (z - mean) / jnp.sqrt(var + BN_EPS)
    out = zn * gamma[None, :, None, None] + beta[None, :, None, None]
    return jnp.maximum(out, 0.0)


if __name__ == "__main__":
    key = jax.random.PRNGKey(0)

    def make_inputs(k, B, C, N):
        k_x, k_w, k_cw, k_cb, k_g, k_b = jax.random.split(k, 6)
        x = jax.random.normal(k_x, (B, C, N, 1), dtype=jnp.float32)
        w = jax.random.normal(k_w, (B, N), dtype=jnp.float32)
        bound = 1.0 / float(C) ** 0.5
        conv_w = jax.random.uniform(k_cw, (C, C), jnp.float32, -bound, bound)
        conv_b = jax.random.uniform(k_cb, (C,), jnp.float32, -bound, bound)
        gamma = 1.0 + 0.1 * jax.random.normal(k_g, (C,), dtype=jnp.float32)
        beta = 0.1 * jax.random.normal(k_b, (C,), dtype=jnp.float32)
        return x, w, conv_w, conv_b, gamma, beta

    configs = [
        (2, 4, 16),    # small-C VPU path, TB=1, grid=(2,)
        (2, 32, 16),   # MXU (per-batch f32 dot) path — validates large-C branch
        (4, 8, 32),    # multi-batch blocks: TB=2, grid=(2,)
    ]
    for idx, (B, C, N) in enumerate(configs):
        args = make_inputs(jax.random.fold_in(key, idx), B, C, N)
        out = jax.block_until_ready(gan_block(*args))
        ref = gan_block_reference(*args)
        assert out.shape == (B, C, N, 1)
        # f32 everywhere; tolerance covers MXU f32 accumulation-order differences.
        assert jnp.allclose(out, ref, atol=2e-4, rtol=2e-4), \
            f"mismatch vs reference for (B,C,N)=({B},{C},{N})"

    print("KERNEL_OK")
</pallas_src>

<mosaic_0001>
module attributes {stable_mosaic.version = 11 : i64} {
  func.func @stats_kernel(%arg0: i32, %arg1: memref<1x4x16xf32, #tpu.memory_space<vmem>>, %arg2: memref<1x1x16xf32, #tpu.memory_space<vmem>>, %arg3: memref<4x4xf32, #tpu.memory_space<vmem>>, %arg4: memref<4x1xf32, #tpu.memory_space<vmem>>, %arg5: memref<1x2x4xf32, #tpu.memory_space<vmem>>) attributes {dimension_semantics = [#tpu.dimension_semantics<parallel>], iteration_bounds = array<i64: 2>, scalar_prefetch = 0 : i64, scratch_operands = 0 : i64, tpu.core_type = #tpu.core_type<tc>, window_params = [{transform_indices = @transform_0, window_bounds = array<i64: 1, 4, 16>}, {transform_indices = @transform_1, window_bounds = array<i64: 1, 1, 16>}, {pipeline_mode = #tpu.pipeline_mode<synchronous>, transform_indices = @transform_2, window_bounds = array<i64: 4, 4>}, {pipeline_mode = #tpu.pipeline_mode<synchronous>, transform_indices = @transform_3, window_bounds = array<i64: 4, 1>}, {transform_indices = @transform_4, window_bounds = array<i64: 1, 2, 4>}]} {
    %c0 = arith.constant 0 : index
    %c0_0 = arith.constant 0 : index
    %c0_1 = arith.constant 0 : index
    %0 = vector.load %arg1[%c0, %c0_0, %c0_1] : memref<1x4x16xf32, #tpu.memory_space<vmem>>, vector<1x4x16xf32>
    %c0_2 = arith.constant 0 : index
    %c0_3 = arith.constant 0 : index
    %c0_4 = arith.constant 0 : index
    %1 = vector.load %arg2[%c0_2, %c0_3, %c0_4] : memref<1x1x16xf32, #tpu.memory_space<vmem>>, vector<1x1x16xf32>
    %c0_5 = arith.constant 0 : index
    %c0_6 = arith.constant 0 : index
    %2 = vector.load %arg3[%c0_5, %c0_6] : memref<4x4xf32, #tpu.memory_space<vmem>>, vector<4x4xf32>
    %c0_7 = arith.constant 0 : index
    %c0_8 = arith.constant 0 : index
    %3 = vector.load %arg4[%c0_7, %c0_8] : memref<4x1xf32, #tpu.memory_space<vmem>>, vector<4x1xf32>
    %4 = math.tanh %1 : vector<1x1x16xf32>
    %cst = arith.constant 0.000000e+00 : f32
    %5 = vector.broadcast %cst : f32 to vector<1x1x16xf32>
    %6 = arith.maximumf %4, %5 : vector<1x1x16xf32>
    %7 = arith.mulf %6, %6 : vector<1x1x16xf32>
    %cst_9 = arith.constant dense<0.000000e+00> : vector<1x1xf32>
    %8 = vector.multi_reduction <add>, %7, %cst_9 [2] : vector<1x1x16xf32> to vector<1x1xf32>
    %9 = vector.shape_cast %8 : vector<1x1xf32> to vector<1x1x1xf32>
    %cst_10 = arith.constant 1.600000e+01 : f32
    %10 = vector.broadcast %cst_10 : f32 to vector<1x1x1xf32>
    %11 = arith.mulf %10, %9 : vector<1x1x1xf32>
    %cst_11 = arith.constant 1.000000e+00 : f32
    %12 = vector.broadcast %cst_11 : f32 to vector<1x1x1xf32>
    %13 = arith.addf %11, %12 : vector<1x1x1xf32>
    %cst_12 = arith.constant 1.000000e+00 : f32
    %14 = vector.broadcast %cst_12 : f32 to vector<1x1x1xf32>
    %15 = arith.divf %14, %13 : vector<1x1x1xf32>
    %cst_13 = arith.constant dense<0.000000e+00> : vector<1x4xf32>
    %16 = vector.multi_reduction <add>, %0, %cst_13 [2] : vector<1x4x16xf32> to vector<1x4xf32>
    %17 = vector.shape_cast %16 : vector<1x4xf32> to vector<1x4x1xf32>
    %18 = vector.broadcast %9 : vector<1x1x1xf32> to vector<1x4x1xf32>
    %19 = arith.mulf %18, %17 : vector<1x4x1xf32>
    %20 = vector.broadcast %19 : vector<1x4x1xf32> to vector<1x4x16xf32>
    %21 = arith.addf %20, %0 : vector<1x4x16xf32>
    %22 = vector.broadcast %15 : vector<1x1x1xf32> to vector<1x4x16xf32>
    %23 = arith.mulf %22, %21 : vector<1x4x16xf32>
    %24 = vector.shape_cast %3 : vector<4x1xf32> to vector<1x4x1xf32>
    %25 = vector.shape_cast %24 : vector<1x4x1xf32> to vector<1x4x1xf32>
    %26 = vector.broadcast %25 : vector<1x4x1xf32> to vector<1x4x16xf32>
    %27 = vector.extract_strided_slice %2 {offsets = [0, 0], sizes = [4, 1], strides = [1, 1]} : vector<4x4xf32> to vector<4x1xf32>
    %28 = vector.shape_cast %27 : vector<4x1xf32> to vector<1x4x1xf32>
    %29 = vector.extract_strided_slice %23 {offsets = [0, 0, 0], sizes = [1, 1, 16], strides = [1, 1, 1]} : vector<1x4x16xf32> to vector<1x1x16xf32>
    %30 = vector.broadcast %28 : vector<1x4x1xf32> to vector<1x4x16xf32>
    %31 = vector.broadcast %29 : vector<1x1x16xf32> to vector<1x4x16xf32>
    %32 = arith.mulf %30, %31 : vector<1x4x16xf32>
    %33 = arith.addf %26, %32 : vector<1x4x16xf32>
    %34 = vector.extract_strided_slice %2 {offsets = [0, 1], sizes = [4, 1], strides = [1, 1]} : vector<4x4xf32> to vector<4x1xf32>
    %35 = vector.shape_cast %34 : vector<4x1xf32> to vector<1x4x1xf32>
    %36 = vector.extract_strided_slice %23 {offsets = [0, 1, 0], sizes = [1, 1, 16], strides = [1, 1, 1]} : vector<1x4x16xf32> to vector<1x1x16xf32>
    %37 = vector.broadcast %35 : vector<1x4x1xf32> to vector<1x4x16xf32>
    %38 = vector.broadcast %36 : vector<1x1x16xf32> to vector<1x4x16xf32>
    %39 = arith.mulf %37, %38 : vector<1x4x16xf32>
    %40 = arith.addf %33, %39 : vector<1x4x16xf32>
    %41 = vector.extract_strided_slice %2 {offsets = [0, 2], sizes = [4, 1], strides = [1, 1]} : vector<4x4xf32> to vector<4x1xf32>
    %42 = vector.shape_cast %41 : vector<4x1xf32> to vector<1x4x1xf32>
    %43 = vector.extract_strided_slice %23 {offsets = [0, 2, 0], sizes = [1, 1, 16], strides = [1, 1, 1]} : vector<1x4x16xf32> to vector<1x1x16xf32>
    %44 = vector.broadcast %42 : vector<1x4x1xf32> to vector<1x4x16xf32>
    %45 = vector.broadcast %43 : vector<1x1x16xf32> to vector<1x4x16xf32>
    %46 = arith.mulf %44, %45 : vector<1x4x16xf32>
    %47 = arith.addf %40, %46 : vector<1x4x16xf32>
    %48 = vector.extract_strided_slice %2 {offsets = [0, 3], sizes = [4, 1], strides = [1, 1]} : vector<4x4xf32> to vector<4x1xf32>
    %49 = vector.shape_cast %48 : vector<4x1xf32> to vector<1x4x1xf32>
    %50 = vector.extract_strided_slice %23 {offsets = [0, 3, 0], sizes = [1, 1, 16], strides = [1, 1, 1]} : vector<1x4x16xf32> to vector<1x1x16xf32>
    %51 = vector.broadcast %49 : vector<1x4x1xf32> to vector<1x4x16xf32>
    %52 = vector.broadcast %50 : vector<1x1x16xf32> to vector<1x4x16xf32>
    %53 = arith.mulf %51, %52 : vector<1x4x16xf32>
    %54 = arith.addf %47, %53 : vector<1x4x16xf32>
    %cst_14 = arith.constant dense<0.000000e+00> : vector<1x4xf32>
    %55 = vector.multi_reduction <add>, %54, %cst_14 [2] : vector<1x4x16xf32> to vector<1x4xf32>
    %cst_15 = arith.constant dense<0.000000e+00> : vector<4xf32>
    %56 = vector.multi_reduction <add>, %55, %cst_15 [0] : vector<1x4xf32> to vector<4xf32>
    %57 = vector.shape_cast %56 : vector<4xf32> to vector<1x4xf32>
    %58 = arith.mulf %54, %54 : vector<1x4x16xf32>
    %cst_16 = arith.constant dense<0.000000e+00> : vector<1x4xf32>
    %59 = vector.multi_reduction <add>, %58, %cst_16 [2] : vector<1x4x16xf32> to vector<1x4xf32>
    %cst_17 = arith.constant dense<0.000000e+00> : vector<4xf32>
    %60 = vector.multi_reduction <add>, %59, %cst_17 [0] : vector<1x4xf32> to vector<4xf32>
    %61 = vector.shape_cast %60 : vector<4xf32> to vector<1x4xf32>
    %c0_18 = arith.constant 0 : index
    %c0_19 = arith.constant 0 : index
    %c0_20 = arith.constant 0 : index
    %62 = vector.load %arg5[%c0_18, %c0_19, %c0_20] : memref<1x2x4xf32, #tpu.memory_space<vmem>>, vector<1x1x4xf32>
    %63 = vector.shape_cast %62 : vector<1x1x4xf32> to vector<1x4xf32>
    %64 = vector.shape_cast %57 : vector<1x4xf32> to vector<1x1x4xf32>
    tpu.vector_store %arg5[%c0_18, %c0_19, %c0_20], %64 {strides = array<i32>} : memref<1x2x4xf32, #tpu.memory_space<vmem>>, vector<1x1x4xf32>,
    %c0_21 = arith.constant 0 : index
    %c1 = arith.constant 1 : index
    %c0_22 = arith.constant 0 : index
    %65 = vector.load %arg5[%c0_21, %c1, %c0_22] : memref<1x2x4xf32, #tpu.memory_space<vmem>>, vector<1x1x4xf32>
    %66 = vector.shape_cast %65 : vector<1x1x4xf32> to vector<1x4xf32>
    %67 = vector.shape_cast %61 : vector<1x4xf32> to vector<1x1x4xf32>
    tpu.vector_store %arg5[%c0_21, %c1, %c0_22], %67 {strides = array<i32>} : memref<1x2x4xf32, #tpu.memory_space<vmem>>, vector<1x1x4xf32>,
    return
  }
  func.func @transform_0(%arg0: i32) -> (i32, i32, i32) {
    %c0_i32 = arith.constant 0 : i32
    %c0_i32_0 = arith.constant 0 : i32
    %c0_i32_1 = arith.constant 0 : i32
    return %arg0, %c0_i32, %c0_i32_0 : i32, i32, i32
  }
  func.func @transform_1(%arg0: i32) -> (i32, i32, i32) {
    %c0_i32 = arith.constant 0 : i32
    %c0_i32_0 = arith.constant 0 : i32
    %c0_i32_1 = arith.constant 0 : i32
    return %arg0, %c0_i32, %c0_i32_0 : i32, i32, i32
  }
  func.func @transform_2(%arg0: i32) -> (i32, i32) {
    %c0_i32 = arith.constant 0 : i32
    %c0_i32_0 = arith.constant 0 : i32
    %c0_i32_1 = arith.constant 0 : i32
    return %c0_i32, %c0_i32_0 : i32, i32
  }
  func.func @transform_3(%arg0: i32) -> (i32, i32) {
    %c0_i32 = arith.constant 0 : i32
    %c0_i32_0 = arith.constant 0 : i32
    %c0_i32_1 = arith.constant 0 : i32
    return %c0_i32, %c0_i32_0 : i32, i32
  }
  func.func @transform_4(%arg0: i32) -> (i32, i32, i32) {
    %c0_i32 = arith.constant 0 : i32
    %c0_i32_0 = arith.constant 0 : i32
    %c0_i32_1 = arith.constant 0 : i32
    return %arg0, %c0_i32, %c0_i32_0 : i32, i32, i32
  }
}

</mosaic_0001>

<bundles_post_ra>
// kernel: tpu_custom_call.1
= control target key start
LH: loop header
LB: loop body
LE: loop exit
PB: predicated region body
PF: predicated region fallthrough
CT: control target
= control target key end

     0   :  { %9 = vsyncpa [#allocation3], 0  ;;  %s798_s0 = inlined_call_operand.hbm [shape: f32[2,4,16], index: 0, kind: input, shape index: {}]   ;;  %s799_s1 = inlined_call_operand.vmem [shape: f32[2,1,16], index: 1, kind: input, shape index: {}]   ;;  %s800_s2 = inlined_call_operand.vmem [shape: f32[4,4], index: 2, kind: input, shape index: {}]   ;;  %s801_s3 = inlined_call_operand.vmem [shape: f32[4,1], index: 3, kind: input, shape index: {}]   ;;  %s802_s4 = inlined_call_operand.hbm [shape: f32[2,2,4], index: 4, kind: output, shape index: {}]  }
   0x1   :  { %11 = vsyncpa [#allocation3 + $0x1], 0 }
   0x2   :  { %12 = vsyncpa [#allocation4], 0 }
   0x3   :  { %14 = vsyncpa [#allocation4 + $0x1], 0  ;;  %s622_s15 = smov 0   ;;  %s624_s16 = smov 0  }
   0x4   :  { %s626_s17 = smov 0   ;;  %s628_s18 = smov 0  }
   0x5 LB: > { %s643_s19 = sadd.s32 4294967295, %s589_s18   ;;  %s422_s20 = sadd.s32 4294967294, %s589_s18   ;;  %s589_s18 = sphi %s628_s18, %s817_s18   ;;  %s585_s17 = sphi %s626_s17, %s816_s17   ;;  %s581_s16 = sphi %s624_s16, %s815_s16   ;;  %s577_s15 = sphi %s622_s15, %s814_s15  }
   0x6   : > { %s647_s21 = sadd.s32 1, %s589_s18   ;;  %s27_s22 = sadd.s32 1, %s585_s17 }
   0x7   : > { %s24_s23 = ssub.s32 %s589_s18, %s647_s21  ;;  %p34_p0 = scmp.ne.s32.totalorder %s585_s17, %s581_s16 }
   0x8   : > { %p25_p1 = scmp.eq.s32.totalorder %s24_s23, 0  ;;  %p35_p2 = scmp.eq.s32.totalorder %s589_s18, 0 }
   0x9   : > { %p40_p3 = scmp.ne.s32.totalorder %s581_s16, %s577_s15  ;;  %p41_p4 = scmp.eq.s32.totalorder %s643_s19, 0 }
   0xa   : > { %s659_s24 = scalar_select %p25_p1, %s585_s17, %s27_s22  }
   0xb   : > { %p661_p5 = por %p35_p2, %p34_p0  ;;  %p665_p6 = por %p41_p4, %p40_p3 }
   0xc   : > { %p132_p7 = scmp.eq.s32.totalorder %s643_s19, 1  ;;  %p138_p8 = scmp.eq.s32.totalorder %s422_s20, 1 }
   0xd   : > { %p446_p10 = scmp.lt.s32.totalorder %s589_s18, 2  ;;  %s164_s29 = sand.u32 1, %s585_s17  }
   0xe   : > { %p672_p11 = por %p132_p7, %p34_p0  ;;  %p676_p12 = por %p138_p8, %p40_p3 }
   0xf   : > { %s426_s30 = sshll.u32 %s589_s18, 6  ;;  %s425_s5 = sshll.u32 %s164_s29, 2 }
  0x10   : > { %s806_s27 = scalar_select %p672_p11, 1, 0 }
  0x11   : > { %s807_s28 = scalar_select %p676_p12, 1, 0 }
  0x12   : > { %s685_s8 = scalar_lea.hbm %s798_s0, %s426_s30  ;;  %s168_s9 = scalar_lea.vmem [#allocation2], %s425_s5 }
  0x13   : > { %s175_s10 = sshll.u32 %s168_s9, 4  ;;  %p689_p13 = pnand %p446_p10, %p661_p5  ;;  %s693_s10 = int_to_ptr.vmem [resolvable:$true] %s175_s10 }
  0x14   : > { %s165_s12 = scalar_lea.sflag [#allocation3], %s164_s29  ;;  %s493_s13 = scalar_lea.hbm %s685_s8, 64 }
  0x15   : > { %p494_p2 = scmp.ne.s32.totalorder %s685_s8, %s493_s13  ;;  %p495_p3 = pneg %p689_p13 }
  0x16   : > { %s498_s22 = scalar_lea.hbm %s798_s0, 128  ;;  %p499_p5 = scmp.lt.u32.totalorder %s685_s8, %s798_s0 }
  0x17   : > { %p496_p4 = pnand %p495_p3, %p494_p2  ;;  %p500_p8 = scmp.lt.u32.totalorder %s498_s22, %s493_s13 }
  0x18   : > { %p502_p9 = scmp.lt.u32.totalorder %s493_s13, %s685_s8 }
  0x19   : > { %p497_p7 = pneg %p496_p4  ;;  %p501_p10 = por %p500_p8, %p499_p5 }
  0x1b   : > { %p503_p0 = por %p502_p9, %p501_p10 }
  0x1d   : > { %p504_p1 = pnand %p503_p0, %p497_p7 }
  0x1f   : > { %507 = shalt.err (!%p504_p1)
}
  0x20   : > { %s508_s29 = scalar_lea.vmem %s693_s10, 64  ;;  %s591_s30 = smov [#allocation2]  }
  0x21   : > { %p509_p2 = scmp.ne.s32.totalorder %s693_s10, %s508_s29  ;;  %s513_s5 = sshll.u32 %s591_s30, 4  ;;  %s514_s5 = int_to_ptr.vmem [resolvable:$false] %s513_s5 }
  0x22   : > { %s515_s6 = scalar_lea.vmem %s514_s5, 128  ;;  %p516_p11 = scmp.lt.s32.totalorder %s693_s10, %s514_s5 }
  0x23   : > { %p511_p4 = pnand %p509_p2, %p495_p3  ;;  %p517_p5 = scmp.lt.s32.totalorder %s515_s6, %s508_s29 }
  0x25   : > { %p512_p12 = pneg %p511_p4  ;;  %p518_p8 = por %p517_p5, %p516_p11 }
  0x27   : > { %p519_p9 = pnand %p518_p8, %p512_p12 }
  0x29   : > { %522 = shalt.err (!%p519_p9)
}
  0x2a   : > { %441 = dma.hbm_to_vmem [thread:$0]  (!%p689_p13), %s685_s8, 64, %s693_s10, %s165_s12  }
  0x2b   : > { %p809_p0 = scmp.lt.s32.totalorder %s589_s18, 3  ;;  %p810_p1 = scmp.ge.s32.totalorder %s589_s18, 1 }
  0x2d   : > { %p187_p3 = pnand %p810_p1, %p809_p0 }
  0x2e   : > { %s727_s7 = sand.u32 (!%p187_p3), 1, %s581_s16  }
  0x2f   : > { %190 = sbr.rel (%p187_p3) target bundleno = 411 (0x19b), region = 36  ;;  %s428_s9 = sshll.u32 (!%p187_p3), %s727_s7, 2 }
  0x30   : > { %s193_s13 = scalar_lea.sflag (!%p187_p3), [#allocation3], %s727_s7  ;;  %s196_s14 = scalar_lea.vmem (!%p187_p3), [#allocation2], %s428_s9 }
  0x36   : > { %568 = dma.done.wait (%p665_p6), %s193_s13, 64  }
  0x37   : > { %570 = vsyncadd (%p665_p6), %s193_s13, 4294967232  ;;  %p224_p11 = scmp.lt.s32.totalorder %s643_s19, 1  ;;  %v592_v0 = vmov 0   ;;  %v593_v1 = vmov 1   ;;  %vm242_vm0 = vcmask 125952   ;;  %v594_v7 = vmov 2  }
  0x38   : > { %484 = vset.pattern.permute.xlu1 %v592_v0  ;;  %485 = vset.pattern.permute.xlu0 %v593_v1  ;;  %v227_v2 = vld [vmem:[%s196_s14] sm:$0xf]  ;;  %vm234_vm1 = vcmask 122880   ;;  %v595_v11 = vmov 3   ;;  %v246_v13 = vlaneseq  ;;  %s429_s25 = sshll.u32 %s727_s7, 1  ;;  %vm320_vm2 = vcmask 24576  }
  0x39   : > { %s225_s8 = scalar_select %p224_p11, %s643_s19, 1  ;;  %v229_v4 = vld [vmem:[%s800_s2] sm:$0xf]  ;;  %v243_v5 = vsel %vm242_vm0, %v227_v2, 0.0 }
  0x3a   : > { %264 = vperm.xlu1 %484, %v229_v4   ;;  %244 = vadd.xlane.f32.xlu0 %v243_v5  ;;  %v230_v6 = vld [vmem:[%s801_s3] sm:$0xf]  ;;  %v247_v14 = vshrl.u32 %v246_v13, 7  ;;  %v314_v15 = vand.u32 127, %v246_v13  ;;  %s431_s29 = sshll.u32 %s643_s19, 5  ;;  %s223_s30 = scalar_lea.vmem [#allocation5], %s429_s25 }
  0x3b   : > { %s226_s12 = scalar_lea.vmem %s799_s1, %s225_s8  ;;  %s343_s5 = sshll.u32 %s223_s30, 4  ;;  %s756_s5 = int_to_ptr.vmem [resolvable:$true] %s343_s5 }
  0x3c   : > { %v228_v3 = vld [vmem:[%s226_s12] sm:$0x1]  ;;  %v317_v16 = vsub.s32 %v314_v15, %v247_v14  ;;  %v248_v21 = vsub.s32 0, %v247_v14  ;;  %v279_v29 = vsub.s32 1, %v247_v14  ;;  %v289_v31 = vsub.s32 2, %v247_v14  ;;  %s754_s13 = scalar_lea.hbm %s802_s4, %s431_s29  ;;  %s330_s14 = scalar_lea.sflag [#allocation4], %s727_s7 }
  0x3d   : > { %489 = vtanh.f32 %v228_v3  ;;  %v299_v34 = vsub.s32 3, %v247_v14  ;;  %s523_s8 = scalar_lea.vmem %s756_s5, 32  ;;  %p811_p12 = scmp.ne.s32.totalorder %s806_s27, 0 }
  0x3e   : > { %259 = vperm.xlu1 %484, %v230_v6   ;;  %p524_p6 = scmp.ne.s32.totalorder %s756_s5, %s523_s8  ;;  %s596_s19 = smov [#allocation5]  }
  0x3f   : > { %s527_s10 = sshll.u32 %s596_s19, 4  ;;  %s528_s10 = int_to_ptr.vmem [resolvable:$false] %s527_s10 }
  0x40   : > { %p525_p13 = pnand %p524_p6, %p811_p12  ;;  %s529_s11 = scalar_lea.vmem %s528_s10, 64 }
  0x41   : > { %p530_p10 = scmp.lt.s32.totalorder %s756_s5, %s528_s10  ;;  %p531_p2 = scmp.lt.s32.totalorder %s529_s11, %s523_s8 }
  0x42   : > { %486 = vset.pattern.permute.xlu1 %v594_v7  ;;  %p526_p7 = pneg %p525_p13 }
  0x43   : > { %284 = vperm.xlu1 %486, %v229_v4   ;;  %p532_p4 = por %p531_p2, %p530_p10 }
  0x45   : > { %p533_p5 = pnand %p532_p4, %p526_p7 }
  0x47   : > { %v490_v8 = vpop.eup %489  ;;  %487 = vset.pattern.permute.xlu1 %v595_v11 }
  0x48   : > { %v232_v9 = vmax.f32 %v490_v8, 0.0  ;;  %294 = vperm.xlu1 %487, %v229_v4  }
  0x4a   : > { %v233_v10 = vmul.f32 %v232_v9, %v232_v9 }
  0x4c   : > { %v235_v12 = vsel %vm234_vm1, %v233_v10, 0.0 }
  0x4d   : > { %236 = vadd.xlane.f32.xlu0 %v235_v12 }
  0x63   : > { %274 = vperm.xlu0 %485, %v229_v4  }
  0x67   : > { %488 = vset.pattern.permute.xlu0 %v595_v11 }
  0xb9   : > { %v265_v22 = vpop.permute.xlu1 %264 }
  0xbd   : > { %v260_v25 = vpop.permute.xlu1 %259 }
  0xc2   : > { %v285_v32 = vpop.permute.xlu1 %284 }
  0xc7   : > { %v245_v17 = vpop.xlane.xlu0 %244  ;;  %v295_v42 = vpop.permute.xlu1 %294 }
  0xda   : > { %v237_v18 = vpop.xlane.xlu0 %236 }
  0xdb   : > { %v238_v19 = vmul.f32 16.0, %v237_v18  ;;  %v249_v23 = vrot.slane %v237_v18, %v248_v21 }
  0xdd   : > { %v239_v20 = vadd.f32 1.0, %v238_v19  ;;  %v250_v24 = vmul.f32 %v249_v23, %v245_v17 }
  0xdf   : > { %491 = vrcp.f32 %v239_v20  ;;  %v251_v27 = vadd.f32 %v250_v24, %v227_v2 }
  0xe2   : > { %v275_v36 = vpop.permute.xlu0 %274 }
  0xe9   : > { %v492_v26 = vpop.eup %491 }
  0xea   : > { %v255_v28 = vrot.slane %v492_v26, %v248_v21 }
  0xec   : > { %v256_v30 = vmul.f32 %v255_v28, %v251_v27 }
  0xee   : > { %v270_v33 = vrot.slane %v256_v30, %v248_v21  ;;  %v280_v35 = vrot.slane %v256_v30, %v279_v29  ;;  %v290_v38 = vrot.slane %v256_v30, %v289_v31  ;;  %v300_v40 = vrot.slane %v256_v30, %v299_v34 }
  0xf0   : > { %v271_v37 = vmul.f32 %v270_v33, %v265_v22  ;;  %v281_v41 = vmul.f32 %v280_v35, %v275_v36  ;;  %v291_v43 = vmul.f32 %v290_v38, %v285_v32  ;;  %v301_v45 = vmul.f32 %v300_v40, %v295_v42 }
  0xf2   : > { %v272_v39 = vadd.f32 %v271_v37, %v260_v25 }
  0xf4   : > { %v282_v44 = vadd.f32 %v281_v41, %v272_v39 }
  0xf6   : > { %v292_v46 = vadd.f32 %v291_v43, %v282_v44 }
  0xf8   : > { %v302_v47 = vadd.f32 %v301_v45, %v292_v46 }
  0xfa   : > { %v303_v48 = vsel %vm242_vm0, %v302_v47, 0.0  ;;  %v307_v49 = vmul.f32 %v302_v47, %v302_v47 }
  0xfb   : > { %304 = vadd.xlane.f32.xlu1 %v303_v48 }
  0xfc   : > { %v308_v50 = vsel %vm242_vm0, %v307_v49, 0.0 }
  0xfd   : > { %309 = vadd.xlane.f32.xlu0 %v308_v50 }
 0x188   : > { %v305_v51 = vpop.xlane.xlu1 %304 }
 0x189   : > { %v318_v52 = vrot.slane %v305_v51, %v317_v16 }
 0x18a   : > { %v310_v53 = vpop.xlane.xlu0 %309 }
 0x18b   : > { %v326_v54 = vrot.slane %v310_v53, %v317_v16  ;;  %321 = vst.msk [vmem:[%s223_s30] sm:$0x1] %vm320_vm2, %v318_v52 }
 0x18d   : > { %328 = vst.msk [vmem:[%s223_s30 + $0x1] sm:$0x1] %vm320_vm2, %v326_v54 }
 0x18e   : > { %536 = shalt.err (!%p533_p5)
}
 0x18f   : > { %s537_s7 = scalar_lea.hbm %s754_s13, 32  ;;  %s541_s22 = scalar_lea.hbm %s802_s4, 64 }
 0x190   : > { %p538_p8 = scmp.ne.s32.totalorder %s754_s13, %s537_s7  ;;  %p542_p1 = scmp.lt.u32.totalorder %s754_s13, %s802_s4 }
 0x191   : > { %p543_p3 = scmp.lt.u32.totalorder %s541_s22, %s537_s7  ;;  %p545_p6 = scmp.lt.u32.totalorder %s537_s7, %s754_s13 }
 0x192   : > { %p539_p9 = pnand %p538_p8, %p811_p12 }
 0x193   : > { %p544_p11 = por %p543_p3, %p542_p1 }
 0x194   : > { %p540_p0 = pneg %p539_p9 }
 0x195   : > { %p546_p13 = por %p545_p6, %p544_p11 }
 0x197   : > { %p547_p7 = pnand %p546_p13, %p540_p0 }
 0x199   : > { %550 = shalt.err (!%p547_p7)
}
 0x19a   : > { %436 = dma.vmem_to_hbm [thread:$0]  (%p811_p12), %s756_s5, 32, %s754_s13, %s330_s14  }
 0x19b PF: > { %s355_s25 = sand.u32 1, %s577_s15   ;;  %p812_p10 = scmp.ne.s32.totalorder %s807_s28, 0 }
 0x19c   : > { %p813_p2 = scmp.ge.s32.totalorder %s589_s18, 2  ;;  %s356_s29 = scalar_lea.sflag [#allocation4], %s355_s25 }
 0x19e   : > { %p443_p4 = pnand %p813_p2, %p812_p10 }
 0x1a0   : > { %572 = dma.done.wait (!%p443_p4), %s356_s29, 32  }
 0x1a1   : > { %574 = vsyncadd (!%p443_p4), %s356_s29, 4294967264  ;;  %p17_p5 = scmp.ge.s32.totalorder %s647_s21, 4   ;;  %s814_s15 = smov %s581_s16 }
 0x1a2   : > { %s815_s16 = smov %s585_s17  ;;  %s816_s17 = smov %s659_s24 }
 0x1a3   : > { %s817_s18 = smov %s647_s21  ;;  %19 = sbr.rel (!%p17_p5) target bundleno = 5 (0x5), region = 84 }
 0x1aa   :  { %361 = vsyncpa [#allocation3], 1 }
 0x1ab   :  { %363 = vsyncpa [#allocation3 + $0x1], 1 }
 0x1ac   :  { %364 = vsyncpa [#allocation4], 1 }
 0x1ad   :  { %366 = vsyncpa [#allocation4 + $0x1], 1 }

</bundles_post_ra>
